<compile_context>
chip_gen: v6e
topology: v6e:2x2x1
jax: 0.10.0
libtpu: 0.0.40
codegen_flags: <defaults>
</compile_context>

<pallas_src>
import jax
import jax.numpy as jnp
from jax import lax
from jax.experimental import pallas as pl
from jax.experimental.pallas import tpu as pltpu

LANE = 128
PAD = 256                               # pad N up to a multiple of this
S_DTYPE = jnp.bfloat16                  # pre-scaled feature dtype fed to the MXU
_VMEM_BUDGET = 40 * 1024 * 1024         # plan target; fits v7x's 64 MiB with headroom
_VMEM_LIMIT = 48 * 1024 * 1024


def _round_up(x, m):
    return ((x + m - 1) // m) * m


def _choose_tiles(n_pad, f_in, f_pad):
    """Pick (tm, tk).  tk == n_pad means the 1-D full-row-stripe schedule."""
    common = 2 * (f_in * f_pad * 4 + f_pad * 4) + 4 * (PAD * 4)     # W, b, dinv, diag bufs
    row_cands = [t for t in (1024, 512, 256) if t <= n_pad and n_pad % t == 0]
    # Prefer >=4 row steps so both TensorCores (v7x) get work; biggest tile first.
    ordered = [t for t in row_cands if n_pad // t >= 4] + \
              [t for t in row_cands if n_pad // t < 4]

    # Preferred: full-row stripe (one DMA + one dot per grid step, no accumulator).
    for tm in ordered:
        vm = (2 * tm * n_pad                 # int8 A stripe, double-buffered
              + 2 * n_pad * f_in * 2         # resident s (bf16)
              + 2 * tm * f_in * 2            # s row tile (self-loop term)
              + 2 * tm * f_pad * 4           # f32 output tile
              + common)
        if vm <= _VMEM_BUDGET:
            return tm, n_pad

    # Fallback: tile the reduction axis, f32 accumulator resident across it.
    for tm in ordered:
        for tk in (4096, 2048, 1024, 512, 256):
            if tk > n_pad or n_pad % tk:
                continue
            vm = (2 * tm * tk + 2 * tk * f_in * 2 + 2 * tm * f_in * 2
                  + 2 * tm * f_pad * 4 + tm * f_in * 4 + common)
            if vm <= _VMEM_BUDGET:
                return tm, tk
    return 256, 256


# ---------------- kernel A: full-row stripe (tk = N_pad), 1-D grid ----------------
# agg_i = dinv_i * (A_row_i @ s) + (2 - A_ii) * dinv_i * s_i ;  out = ReLU(agg @ W + b)
def _gcn_row_kernel(g_ref, s_ref, s_row_ref, dinv_ref, diag_ref, w_ref, b_ref, o_ref):
    a = g_ref[...].astype(jnp.bfloat16)          # int8 adjacency -> bf16 (exact for 0/1)
    acc = jnp.dot(a, s_ref[...], preferred_element_type=jnp.float32)
    dinv = dinv_ref[...]
    agg = dinv * acc + (jnp.float32(2.0) - diag_ref[...]) * dinv * \
        s_row_ref[...].astype(jnp.float32)
    out = jnp.dot(agg, w_ref[...], preferred_element_type=jnp.float32) + b_ref[...]
    o_ref[...] = jnp.maximum(out, jnp.float32(0.0)).astype(o_ref.dtype)


# ---------------- kernel B: tiled reduction, 2-D grid, f32 accumulator ----------------
def _gcn_tiled_kernel(g_ref, s_col_ref, s_row_ref, dinv_ref, diag_ref, w_ref, b_ref,
                      o_ref, acc_ref):
    k = pl.program_id(1)

    @pl.when(k == 0)
    def _():
        acc_ref[...] = jnp.zeros_like(acc_ref)

    acc_ref[...] += jnp.dot(g_ref[...].astype(jnp.bfloat16), s_col_ref[...],
                            preferred_element_type=jnp.float32)

    @pl.when(k == pl.num_programs(1) - 1)
    def _():
        dinv = dinv_ref[...]
        agg = dinv * acc_ref[...] + (jnp.float32(2.0) - diag_ref[...]) * dinv * \
            s_row_ref[...].astype(jnp.float32)
        out = jnp.dot(agg, w_ref[...], preferred_element_type=jnp.float32) + b_ref[...]
        o_ref[...] = jnp.maximum(out, jnp.float32(0.0)).astype(o_ref.dtype)


def precompute_graph(g):
    """One-time per-graph preprocessing.

    Hoist this across GCN layers that reuse the same adjacency: it is the only place
    the f32 adjacency is read; everything downstream streams the 1-byte copy.
    Assumes a {0,1}-valued adjacency (int8 is exact); for weighted graphs swap the
    narrow copy to bf16/f32.
    """
    g = jnp.asarray(g, jnp.float32)
    n = g.shape[0]
    n_pad = _round_up(max(n, PAD), PAD)

    deg = jnp.sum(g, axis=-1)                              # rowsum(A)
    diag = jnp.diagonal(g)
    deg_imp = jnp.maximum(deg - diag + jnp.float32(2.0), jnp.float32(1.0))
    dinv = lax.rsqrt(deg_imp)                              # clamp(min=1) ** -0.5

    adj_i8 = jnp.zeros((n_pad, n_pad), jnp.int8).at[:n, :n].set(g.astype(jnp.int8))
    diag_p = jnp.zeros((n_pad, 1), jnp.float32).at[:n, 0].set(diag)
    dinv_p = jnp.zeros((n_pad, 1), jnp.float32).at[:n, 0].set(dinv)  # padded rows: agg = 0

    return dict(n=n, n_pad=n_pad, adj_i8=adj_i8, diag=diag_p, dinv=dinv_p)


def gcn_apply(graph, h, weight, bias):
    """graph: precompute_graph(g); h: [N, F_in]; weight: [F_in, F_out]; bias: [F_out]."""
    n, n_pad = graph["n"], graph["n_pad"]
    adj_i8, diag, dinv = graph["adj_i8"], graph["diag"], graph["dinv"]

    f_in = h.shape[-1]
    f_out = weight.shape[-1]
    f_pad = _round_up(f_out, LANE)

    # s = D^-1/2 h  (pre-scaled features), padded rows are zero
    s = jnp.zeros((n_pad, f_in), S_DTYPE).at[:n].set(
        (dinv[:n] * h.astype(jnp.float32)).astype(S_DTYPE))

    # lane-dense projection / output (zero-padded to a 128-lane multiple)
    w_pad = jnp.zeros((f_in, f_pad), jnp.float32).at[:, :f_out].set(
        weight.astype(jnp.float32))
    b_pad = jnp.zeros((1, f_pad), jnp.float32).at[:, :f_out].set(
        bias.astype(jnp.float32))

    tm, tk = _choose_tiles(n_pad, f_in, f_pad)

    if tk == n_pad:
        # ---- 1-D grid over row stripes: one DMA + one dot per step ----
        out_pad = pl.pallas_call(
            _gcn_row_kernel,
            grid=(n_pad // tm,),
            in_specs=[
                pl.BlockSpec((tm, n_pad), lambda i: (i, 0)),    # A row stripe (int8)
                pl.BlockSpec((n_pad, f_in), lambda i: (0, 0)),  # s (all rows, bf16)
                pl.BlockSpec((tm, f_in), lambda i: (i, 0)),     # s row tile (self-loop)
                pl.BlockSpec((tm, 1), lambda i: (i, 0)),        # dinv rows
                pl.BlockSpec((tm, 1), lambda i: (i, 0)),        # diag rows
                pl.BlockSpec((f_in, f_pad), lambda i: (0, 0)),  # W (lane-padded)
                pl.BlockSpec((1, f_pad), lambda i: (0, 0)),     # bias (lane-padded)
            ],
            out_specs=pl.BlockSpec((tm, f_pad), lambda i: (i, 0)),
            out_shape=jax.ShapeDtypeStruct((n_pad, f_pad), jnp.float32),
            compiler_params=pltpu.CompilerParams(
                dimension_semantics=("parallel",),
                vmem_limit_bytes=_VMEM_LIMIT),
        )(adj_i8, s, s, dinv, diag, w_pad, b_pad)
    else:
        # ---- 2-D grid: (row tiles, reduction tiles), f32 VMEM accumulator ----
        out_pad = pl.pallas_call(
            _gcn_tiled_kernel,
            grid=(n_pad // tm, n_pad // tk),
            in_specs=[
                pl.BlockSpec((tm, tk), lambda i, k: (i, k)),       # A tile (int8)
                pl.BlockSpec((tk, f_in), lambda i, k: (k, 0)),     # s column tile
                pl.BlockSpec((tm, f_in), lambda i, k: (i, 0)),     # s row tile
                pl.BlockSpec((tm, 1), lambda i, k: (i, 0)),        # dinv rows
                pl.BlockSpec((tm, 1), lambda i, k: (i, 0)),        # diag rows
                pl.BlockSpec((f_in, f_pad), lambda i, k: (0, 0)),  # W
                pl.BlockSpec((1, f_pad), lambda i, k: (0, 0)),     # bias
            ],
            out_specs=pl.BlockSpec((tm, f_pad), lambda i, k: (i, 0)),
            out_shape=jax.ShapeDtypeStruct((n_pad, f_pad), jnp.float32),
            scratch_shapes=[pltpu.VMEM((tm, f_in), jnp.float32)],
            compiler_params=pltpu.CompilerParams(
                dimension_semantics=("parallel", "arbitrary"),
                vmem_limit_bytes=_VMEM_LIMIT),
        )(adj_i8, s, s, dinv, diag, w_pad, b_pad)

    return out_pad[:n, :f_out]


def gcn_forward(g, h, weight, bias):
    """g: [N, N] adjacency, h: [N, F_in], weight: [F_in, F_out], bias: [F_out]."""
    return gcn_apply(precompute_graph(g), h, weight, bias)


def reference_gcn(g, h, weight, bias):
    """Pure-JAX reference mirroring DenseGCNConv(improved=True) + ReLU."""
    N = g.shape[0]
    adj = g.at[jnp.arange(N), jnp.arange(N)].set(2.0)
    deg = jnp.maximum(adj.sum(-1), 1.0) ** -0.5
    adj_norm = deg[:, None] * adj * deg[None, :]
    out = adj_norm @ (h @ weight) + bias
    return jnp.maximum(out, 0.0)


if __name__ == "__main__":
    N, IN_DIM, OUT_DIM = 16, 8, 32

    key = jax.random.PRNGKey(0)
    k_g, k_h, k_w, k_b = jax.random.split(key, 4)

    # symmetric 0/1 adjacency (no self loops; kernel adds improved self loops)
    upper = (jax.random.uniform(k_g, (N, N)) > 0.5).astype(jnp.float32)
    g = jnp.triu(upper, 1)
    g = g + g.T

    h = jax.random.normal(k_h, (N, IN_DIM), dtype=jnp.float32)

    scale = jnp.sqrt(6.0 / (IN_DIM + OUT_DIM))
    weight = jax.random.uniform(k_w, (IN_DIM, OUT_DIM), minval=-scale, maxval=scale,
                                dtype=jnp.float32)
    bias = jax.random.uniform(k_b, (OUT_DIM,), minval=-0.1, maxval=0.1, dtype=jnp.float32)

    out = gcn_forward(g, h, weight, bias)
    jax.block_until_ready(out)

    ref = reference_gcn(g, h, weight, bias)
    assert out.shape == (N, OUT_DIM)
    # Tolerance covers (a) aggregate-then-project reassociation and (b) bf16 storage of
    # the pre-scaled features s = dinv*h fed to the MXU (A itself is exact in int8/bf16).
    assert jnp.allclose(out, ref, atol=2e-2, rtol=2e-2), "mismatch vs reference"

    print("KERNEL_OK")
</pallas_src>

<mosaic_0001>
module attributes {stable_mosaic.version = 11 : i64} {
  func.func @_gcn_row_kernel(%arg0: i32, %arg1: memref<256x256xi8, #tpu.memory_space<vmem>>, %arg2: memref<256x8xbf16, #tpu.memory_space<vmem>>, %arg3: memref<256x8xbf16, #tpu.memory_space<vmem>>, %arg4: memref<256x1xf32, #tpu.memory_space<vmem>>, %arg5: memref<256x1xf32, #tpu.memory_space<vmem>>, %arg6: memref<8x128xf32, #tpu.memory_space<vmem>>, %arg7: memref<1x128xf32, #tpu.memory_space<vmem>>, %arg8: memref<256x128xf32, #tpu.memory_space<vmem>>) attributes {dimension_semantics = [#tpu.dimension_semantics<parallel>], iteration_bounds = array<i64: 1>, scalar_prefetch = 0 : i64, scratch_operands = 0 : i64, tpu.core_type = #tpu.core_type<tc>, window_params = [{transform_indices = @transform_0, window_bounds = array<i64: 256, 256>}, {pipeline_mode = #tpu.pipeline_mode<synchronous>, transform_indices = @transform_1, window_bounds = array<i64: 256, 8>}, {transform_indices = @transform_2, window_bounds = array<i64: 256, 8>}, {transform_indices = @transform_3, window_bounds = array<i64: 256, 1>}, {transform_indices = @transform_4, window_bounds = array<i64: 256, 1>}, {pipeline_mode = #tpu.pipeline_mode<synchronous>, transform_indices = @transform_5, window_bounds = array<i64: 8, 128>}, {pipeline_mode = #tpu.pipeline_mode<synchronous>, transform_indices = @transform_6, window_bounds = array<i64: 1, 128>}, {transform_indices = @transform_7, window_bounds = array<i64: 256, 128>}]} {
    %c0 = arith.constant 0 : index
    %c0_0 = arith.constant 0 : index
    %0 = vector.load %arg1[%c0, %c0_0] : memref<256x256xi8, #tpu.memory_space<vmem>>, vector<256x256xi8>
    %1 = arith.sitofp %0 : vector<256x256xi8> to vector<256x256xbf16>
    %c0_1 = arith.constant 0 : index
    %c0_2 = arith.constant 0 : index
    %2 = vector.load %arg2[%c0_1, %c0_2] : memref<256x8xbf16, #tpu.memory_space<vmem>>, vector<256x8xbf16>
    %cst = arith.constant dense<0.000000e+00> : vector<256x8xf32>
    %3 = tpu.matmul %1, %2, %cst {dimension_numbers = #tpu.dot_dimension_numbers<[1], [0], [0], [1], [0, 0, 1, 1], [], []>} : vector<256x256xbf16>, vector<256x8xbf16>, vector<256x8xf32> -> vector<256x8xf32>
    %c0_3 = arith.constant 0 : index
    %c0_4 = arith.constant 0 : index
    %4 = vector.load %arg4[%c0_3, %c0_4] : memref<256x1xf32, #tpu.memory_space<vmem>>, vector<256x1xf32>
    %5 = vector.broadcast %4 : vector<256x1xf32> to vector<256x8xf32>
    %6 = arith.mulf %5, %3 : vector<256x8xf32>
    %c0_5 = arith.constant 0 : index
    %c0_6 = arith.constant 0 : index
    %7 = vector.load %arg5[%c0_5, %c0_6] : memref<256x1xf32, #tpu.memory_space<vmem>>, vector<256x1xf32>
    %cst_7 = arith.constant 2.000000e+00 : f32
    %8 = vector.broadcast %cst_7 : f32 to vector<256x1xf32>
    %9 = arith.subf %8, %7 : vector<256x1xf32>
    %10 = arith.mulf %9, %4 : vector<256x1xf32>
    %c0_8 = arith.constant 0 : index
    %c0_9 = arith.constant 0 : index
    %11 = vector.load %arg3[%c0_8, %c0_9] : memref<256x8xbf16, #tpu.memory_space<vmem>>, vector<256x8xbf16>
    %12 = arith.extf %11 : vector<256x8xbf16> to vector<256x8xf32>
    %13 = vector.broadcast %10 : vector<256x1xf32> to vector<256x8xf32>
    %14 = arith.mulf %13, %12 : vector<256x8xf32>
    %15 = arith.addf %6, %14 : vector<256x8xf32>
    %c0_10 = arith.constant 0 : index
    %c0_11 = arith.constant 0 : index
    %16 = vector.load %arg6[%c0_10, %c0_11] : memref<8x128xf32, #tpu.memory_space<vmem>>, vector<8x128xf32>
    %cst_12 = arith.constant dense<0.000000e+00> : vector<256x128xf32>
    %17 = tpu.matmul %15, %16, %cst_12 {dimension_numbers = #tpu.dot_dimension_numbers<[1], [0], [0], [1], [0, 0, 1, 1], [], []>} : vector<256x8xf32>, vector<8x128xf32>, vector<256x128xf32> -> vector<256x128xf32>
    %c0_13 = arith.constant 0 : index
    %c0_14 = arith.constant 0 : index
    %18 = vector.load %arg7[%c0_13, %c0_14] : memref<1x128xf32, #tpu.memory_space<vmem>>, vector<1x128xf32>
    %19 = vector.broadcast %18 : vector<1x128xf32> to vector<256x128xf32>
    %20 = arith.addf %17, %19 : vector<256x128xf32>
    %cst_15 = arith.constant 0.000000e+00 : f32
    %21 = vector.broadcast %cst_15 : f32 to vector<256x128xf32>
    %22 = arith.maximumf %20, %21 : vector<256x128xf32>
    %c0_16 = arith.constant 0 : index
    %c0_17 = arith.constant 0 : index
    %23 = vector.load %arg8[%c0_16, %c0_17] : memref<256x128xf32, #tpu.memory_space<vmem>>, vector<256x128xf32>
    tpu.vector_store %arg8[%c0_16, %c0_17], %22 {strides = array<i32>} : memref<256x128xf32, #tpu.memory_space<vmem>>, vector<256x128xf32>,
    return
  }
  func.func @transform_0(%arg0: i32) -> (i32, i32) {
    %c0_i32 = arith.constant 0 : i32
    %c0_i32_0 = arith.constant 0 : i32
    return %arg0, %c0_i32 : i32, i32
  }
  func.func @transform_1(%arg0: i32) -> (i32, i32) {
    %c0_i32 = arith.constant 0 : i32
    %c0_i32_0 = arith.constant 0 : i32
    %c0_i32_1 = arith.constant 0 : i32
    return %c0_i32, %c0_i32_0 : i32, i32
  }
  func.func @transform_2(%arg0: i32) -> (i32, i32) {
    %c0_i32 = arith.constant 0 : i32
    %c0_i32_0 = arith.constant 0 : i32
    return %arg0, %c0_i32 : i32, i32
  }
  func.func @transform_3(%arg0: i32) -> (i32, i32) {
    %c0_i32 = arith.constant 0 : i32
    %c0_i32_0 = arith.constant 0 : i32
    return %arg0, %c0_i32 : i32, i32
  }
  func.func @transform_4(%arg0: i32) -> (i32, i32) {
    %c0_i32 = arith.constant 0 : i32
    %c0_i32_0 = arith.constant 0 : i32
    return %arg0, %c0_i32 : i32, i32
  }
  func.func @transform_5(%arg0: i32) -> (i32, i32) {
    %c0_i32 = arith.constant 0 : i32
    %c0_i32_0 = arith.constant 0 : i32
    %c0_i32_1 = arith.constant 0 : i32
    return %c0_i32, %c0_i32_0 : i32, i32
  }
  func.func @transform_6(%arg0: i32) -> (i32, i32) {
    %c0_i32 = arith.constant 0 : i32
    %c0_i32_0 = arith.constant 0 : i32
    %c0_i32_1 = arith.constant 0 : i32
    return %c0_i32, %c0_i32_0 : i32, i32
  }
  func.func @transform_7(%arg0: i32) -> (i32, i32) {
    %c0_i32 = arith.constant 0 : i32
    %c0_i32_0 = arith.constant 0 : i32
    return %arg0, %c0_i32 : i32, i32
  }
}

</mosaic_0001>

<bundles_post_ra>
// kernel: tpu_custom_call.1
= control target key start
LH: loop header
LB: loop body
LE: loop exit
PB: predicated region body
PF: predicated region fallthrough
CT: control target
= control target key end

     0   :  { %v1766_v3 = vmov 0   ;;  %s2395_s0 = inlined_call_operand.vmem [shape: s8[256,256], index: 0, kind: input, shape index: {}]   ;;  %s2396_s1 = inlined_call_operand.vmem [shape: bf16[256,8], index: 1, kind: input, shape index: {}]   ;;  %s2397_s2 = inlined_call_operand.vmem [shape: bf16[256,8], index: 2, kind: input, shape index: {}]   ;;  %s2398_s3 = inlined_call_operand.vmem [shape: f32[256,1], index: 3, kind: input, shape index: {}]   ;;  %s2399_s4 = inlined_call_operand.vmem [shape: f32[256,1], index: 4, kind: input, shape index: {}]   ;;  %s2400_s5 = inlined_call_operand.vmem [shape: f32[8,128], index: 5, kind: input, shape index: {}]   ;;  %s2401_s6 = inlined_call_operand.vmem [shape: f32[1,128], index: 6, kind: input, shape index: {}]   ;;  %s2402_s7 = inlined_call_operand.hbm [shape: f32[256,128], index: 7, kind: output, shape index: {}]  }
   0x1   :  { %v366_v0 = vld [vmem:[%s2398_s3 + $0x8] sm:$0xff]  ;;  %v365_v2 = vld [vmem:[%s2398_s3] sm:$0xff]  ;;  %1727 = vset.pattern.permute.xlu1 %v1766_v3  ;;  %1726 = vset.pattern.permute.xlu0 %v1766_v3  ;;  %v1728_v7 = vld [vmem:[%s2396_s1 + $0x78] sm:$0xff]  }
   0x2   :  { %v590_v1 = vld [vmem:[%s2399_s4 + $0x8] sm:$0xff]  ;;  %v589_v5 = vld [vmem:[%s2399_s4] sm:$0xff]  ;;  %404 = vperm.xlu1 %1727, %v366_v0   ;;  %399 = vperm.xlu0 %1726, %v365_v2   ;;  %v1729_v9 = vld [vmem:[%s2396_s1 + $0x38] sm:$0xff]  }
   0x3   :  { %v622_v4 = vsub.f32 2.0, %v590_v1  ;;  %v621_v6 = vsub.f32 2.0, %v589_v5  ;;  %1511 = vmatprep.subr.bf16.mxu0 %v1728_v7  ;;  %1706 = vmatprep.subr.bf16.mxu1 %v1728_v7  ;;  %v1730_v11 = vld [vmem:[%s2396_s1 + $0x70] sm:$0xff]   ;;  %v1732_v16 = vld [vmem:[%s2396_s1 + $0x68] sm:$0xff]   ;;  %v368_v18 = vld [vmem:[%s2398_s3 + $0x18] sm:$0xff] }
   0x4   :  { %1512 = vmatpush3.bf16.msra.mxu0 %v1729_v9  ;;  %1714 = vmatpush3.bf16.msra.mxu1 %v1729_v9  ;;  %v1731_v12 = vld [vmem:[%s2396_s1 + $0x30] sm:$0xff]   ;;  %v592_v19 = vld [vmem:[%s2399_s4 + $0x18] sm:$0xff]  ;;  %v1733_v20 = vld [vmem:[%s2396_s1 + $0x28] sm:$0xff]  }
   0x5   :  { %v654_v8 = vmul.f32 %v622_v4, %v366_v0  ;;  %v653_v10 = vmul.f32 %v621_v6, %v365_v2  ;;  %v367_v13 = vld [vmem:[%s2398_s3 + $0x10] sm:$0xff]  ;;  %1513 = vmatprep.subr.bf16.mxu0 %v1730_v11  ;;  %1707 = vmatprep.subr.bf16.mxu1 %v1730_v11  ;;  %v624_v21 = vsub.f32 2.0, %v592_v19  ;;  %v1734_v22 = vld [vmem:[%s2396_s1 + $0x60] sm:$0xff]   ;;  %v594_v28 = vld [vmem:[%s2399_s4 + $0x28] sm:$0xff] }
   0x6   :  { %v591_v14 = vld [vmem:[%s2399_s4 + $0x10] sm:$0xff]  ;;  %v369_v23 = vld [vmem:[%s2398_s3 + $0x20] sm:$0xff]  ;;  %v1736_v30 = vld [vmem:[%s2396_s1 + $0x58] sm:$0xff]   ;;  %v626_v31 = vsub.f32 2.0, %v594_v28 }
   0x7   :  { %756 = vperm.xlu1 %1727, %v654_v8   ;;  %751 = vperm.xlu0 %1726, %v653_v10   ;;  %v623_v15 = vsub.f32 2.0, %v591_v14  ;;  %v656_v24 = vmul.f32 %v624_v21, %v368_v18  ;;  %v593_v25 = vld [vmem:[%s2399_s4 + $0x20] sm:$0xff]  ;;  %v370_v32 = vld [vmem:[%s2398_s3 + $0x28] sm:$0xff]  ;;  %v595_v33 = vld [vmem:[%s2399_s4 + $0x30] sm:$0xff] }
   0x8   :  { %1514 = vmatpush3.bf16.msra.mxu0 %v1731_v12  ;;  %1715 = vmatpush3.bf16.msra.mxu1 %v1731_v12  ;;  %v625_v26 = vsub.f32 2.0, %v593_v25  ;;  %v1735_v27 = vld [vmem:[%s2396_s1 + $0x20] sm:$0xff]   ;;  %v1737_v34 = vld [vmem:[%s2396_s1 + $0x18] sm:$0xff]   ;;  %v658_v35 = vmul.f32 %v626_v31, %v370_v32  ;;  %v1738_v36 = vld [vmem:[%s2396_s1 + $0x50] sm:$0xff]   ;;  %v627_v38 = vsub.f32 2.0, %v595_v33 }
   0x9   :  { %v655_v17 = vmul.f32 %v623_v15, %v367_v13  ;;  %1515 = vmatprep.subr.bf16.mxu0 %v1732_v16  ;;  %1708 = vmatprep.subr.bf16.mxu1 %v1732_v16  ;;  %v371_v37 = vld [vmem:[%s2398_s3 + $0x30] sm:$0xff]  ;;  %v596_v39 = vld [vmem:[%s2399_s4 + $0x38] sm:$0xff]  ;;  %v29_v43 = vld [vmem:[%s2395_s0 + $0x8] sm:$0xff] }
   0xa   :  { %v657_v29 = vmul.f32 %v625_v26, %v369_v23  ;;  %v1739_v40 = vld [vmem:[%s2396_s1 + $0x10] sm:$0xff]   ;;  %v659_v41 = vmul.f32 %v627_v38, %v371_v37  ;;  %v628_v42 = vsub.f32 2.0, %v596_v39  ;;  %v41_v44 = vld [vmem:[%s2395_s0 + $0x68] sm:$0xff]  ;;  %v372_v46 = vld [vmem:[%s2398_s3 + $0x38] sm:$0xff]  ;;  %v45_v48 = vunpack.c.l.s8.bf16 %v29_v43 }
   0xb   :  { %761 = vperm.xlu1 %1727, %v655_v17   ;;  %409 = vperm.xlu0 %1726, %v367_v13   ;;  %v1740_v45 = vld [vmem:[%s2396_s1 + $0x48] sm:$0xff]   ;;  %v597_v47 = vld [vmem:[%s2399_s4 + $0x40] sm:$0xff]  ;;  %v69_v49 = vunpack.c.l.s8.bf16 %v41_v44  ;;  %v599_v62 = vld [vmem:[%s2399_s4 + $0x50] sm:$0xff]  ;;  %v47_v1 = vunpack.c.h.s8.bf16 %v29_v43  ;;  %v71_v2 = vunpack.c.h.s8.bf16 %v41_v44 }
   0xc   :  { %1516 = vmatpush3.bf16.msra.mxu0 %v1733_v20  ;;  %1716 = vmatpush3.bf16.msra.mxu1 %v1733_v20  ;;  %v1741_v50 = vld [vmem:[%s2396_s1 + $0x8] sm:$0xff]   ;;  %v660_v51 = vmul.f32 %v628_v42, %v372_v46  ;;  %v629_v52 = vsub.f32 2.0, %v597_v47  ;;  %v1742_v53 = vld [vmem:[%s2396_s1 + $0x40] sm:$0xff]   ;;  %v631_v4 = vsub.f32 2.0, %v599_v62  ;;  %v375_v5 = vld [vmem:[%s2398_s3 + $0x50] sm:$0xff] }
   0xd   :  { %1517 = vmatprep.subr.bf16.mxu0 %v1734_v22  ;;  %1709 = vmatprep.subr.bf16.mxu1 %v1734_v22  ;;  %v373_v54 = vld [vmem:[%s2398_s3 + $0x40] sm:$0xff]  ;;  %v598_v55 = vld [vmem:[%s2399_s4 + $0x48] sm:$0xff]  ;;  %v600_v6 = vld [vmem:[%s2399_s4 + $0x58] sm:$0xff] }
   0xe   :  { %236 = vmatprep.mubr.bf16.mxu0 %v45_v48  ;;  %332 = vmatprep.mubr.bf16.mxu1 %v69_v49  ;;  %v1743_v56 = vld [vmem:[%s2396_s1] sm:$0xff]   ;;  %v661_v59 = vmul.f32 %v629_v52, %v373_v54  ;;  %v630_v60 = vsub.f32 2.0, %v598_v55  ;;  %v374_v61 = vld [vmem:[%s2398_s3 + $0x48] sm:$0xff]  ;;  %v663_v7 = vmul.f32 %v631_v4, %v375_v5  ;;  %v632_v8 = vsub.f32 2.0, %v600_v6  ;;  %v31_v9 = vld [vmem:[%s2395_s0 + $0x18] sm:$0xff] }
   0xf   :  { %766 = vperm.xlu1 %1727, %v656_v24   ;;  %414 = vperm.xlu0 %1726, %v368_v18   ;;  %v28_v57 = vld [vmem:[%s2395_s0] sm:$0xff]  ;;  %v43_v10 = vld [vmem:[%s2395_s0 + $0x78] sm:$0xff]  ;;  %v49_v15 = vunpack.c.l.s8.bf16 %v31_v9  ;;  %v602_v20 = vld [vmem:[%s2399_s4 + $0x68] sm:$0xff] }
  0x10   :  { %1518 = vmatpush3.bf16.msra.mxu0 %v1735_v27  ;;  %1717 = vmatpush3.bf16.msra.mxu1 %v1735_v27  ;;  %v40_v58 = vld [vmem:[%s2395_s0 + $0x60] sm:$0xff]  ;;  %v44_v63 = vunpack.c.l.s8.bf16 %v28_v57  ;;  %v662_v3 = vmul.f32 %v630_v60, %v374_v61  ;;  %v376_v11 = vld [vmem:[%s2398_s3 + $0x58] sm:$0xff]  ;;  %v46_v13 = vunpack.c.h.s8.bf16 %v28_v57  ;;  %v73_v16 = vunpack.c.l.s8.bf16 %v43_v10  ;;  %v30_v21 = vld [vmem:[%s2395_s0 + $0x10] sm:$0xff] }
  0x11   :  { %1519 = vmatprep.subr.bf16.mxu0 %v1736_v30  ;;  %1710 = vmatprep.subr.bf16.mxu1 %v1736_v30  ;;  %v68_v0 = vunpack.c.l.s8.bf16 %v40_v58  ;;  %v601_v12 = vld [vmem:[%s2399_s4 + $0x60] sm:$0xff]  ;;  %v70_v14 = vunpack.c.h.s8.bf16 %v40_v58  ;;  %v664_v17 = vmul.f32 %v632_v8, %v376_v11  ;;  %v42_v22 = vld [vmem:[%s2395_s0 + $0x70] sm:$0xff] }
  0x12   :  { %v633_v18 = vsub.f32 2.0, %v601_v12  ;;  %v377_v19 = vld [vmem:[%s2398_s3 + $0x60] sm:$0xff] }
  0x13   :  { %771 = vperm.xlu1 %1727, %v657_v29   ;;  %419 = vperm.xlu0 %1726, %v369_v23  }
  0x14   :  { %1520 = vmatpush3.bf16.msra.mxu0 %v1737_v34  ;;  %1718 = vmatpush3.bf16.msra.mxu1 %v1737_v34 }
  0x15   :  { %1521 = vmatprep.subr.bf16.mxu0 %v1738_v36  ;;  %1711 = vmatprep.subr.bf16.mxu1 %v1738_v36 }
  0x17   :  { %776 = vperm.xlu1 %1727, %v658_v35   ;;  %424 = vperm.xlu0 %1726, %v370_v32  }
  0x18   :  { %1522 = vmatpush3.bf16.msra.mxu0 %v1739_v40  ;;  %1719 = vmatpush3.bf16.msra.mxu1 %v1739_v40 }
  0x19   :  { %1523 = vmatprep.subr.bf16.mxu0 %v1740_v45  ;;  %1712 = vmatprep.subr.bf16.mxu1 %v1740_v45 }
  0x1b   :  { %781 = vperm.xlu1 %1727, %v659_v41   ;;  %429 = vperm.xlu0 %1726, %v371_v37  }
  0x1c   :  { %1524 = vmatpush3.bf16.msra.mxu0 %v1741_v50  ;;  %1720 = vmatpush3.bf16.msra.mxu1 %v1741_v50 }
  0x1d   :  { %1525 = vmatprep.subr.bf16.mxu0 %v1742_v53  ;;  %1713 = vmatprep.subr.bf16.mxu1 %v1742_v53 }
  0x1f   :  { %786 = vperm.xlu1 %1727, %v660_v51   ;;  %434 = vperm.xlu0 %1726, %v372_v46  }
  0x20   :  { %1526 = vmatpush3.bf16.msra.mxu0 %v1743_v56  ;;  %1721 = vmatpush3.bf16.msra.mxu1 %v1743_v56 }
  0x23   :  { %791 = vperm.xlu1 %1727, %v661_v59   ;;  %439 = vperm.xlu0 %1726, %v373_v54  }
  0x24   :  { %237 = vmatmul.mubr.bf16.vlgmr.msra.gmra.mxu0 %v44_v63  ;;  %333 = vmatmul.mubr.bf16.vlgmr.msra.gmra.mxu1 %v68_v0 }
  0x25   :  { %244 = vmatprep.mubr.bf16.mxu0 %v47_v1  ;;  %340 = vmatprep.mubr.bf16.mxu1 %v71_v2 }
  0x27   :  { %796 = vperm.xlu1 %1727, %v662_v3   ;;  %444 = vperm.xlu0 %1726, %v374_v61  }
  0x2b   :  { %801 = vperm.xlu1 %1727, %v663_v7   ;;  %449 = vperm.xlu0 %1726, %v375_v5  }
  0x2c   :  { %245 = vmatmul.mubr.bf16.gmra.mxu0 %v46_v13  ;;  %341 = vmatmul.mubr.bf16.gmra.mxu1 %v70_v14 }
  0x2d   :  { %252 = vmatprep.mubr.bf16.mxu0 %v49_v15  ;;  %348 = vmatprep.mubr.bf16.mxu1 %v73_v16 }
  0x2e   :  { %12 = vsyncpa [#allocation3], 0  ;;  %v665_v23 = vmul.f32 %v633_v18, %v377_v19  ;;  %v634_v24 = vsub.f32 2.0, %v602_v20  ;;  %v378_v25 = vld [vmem:[%s2398_s3 + $0x68] sm:$0xff]  ;;  %v603_v26 = vld [vmem:[%s2399_s4 + $0x70] sm:$0xff]  ;;  %v48_v27 = vunpack.c.l.s8.bf16 %v30_v21  ;;  %v72_v28 = vunpack.c.l.s8.bf16 %v42_v22 }
  0x2f   :  { %806 = vperm.xlu1 %1727, %v664_v17   ;;  %454 = vperm.xlu0 %1726, %v376_v11   ;;  %v51_v29 = vunpack.c.h.s8.bf16 %v31_v9  ;;  %v75_v30 = vunpack.c.h.s8.bf16 %v43_v10  ;;  %v635_v32 = vsub.f32 2.0, %v603_v26  ;;  %v379_v33 = vld [vmem:[%s2398_s3 + $0x70] sm:$0xff]  ;;  %v604_v34 = vld [vmem:[%s2399_s4 + $0x78] sm:$0xff]  ;;  %v33_v37 = vld [vmem:[%s2395_s0 + $0x28] sm:$0xff]  ;;  %v50_v40 = vunpack.c.h.s8.bf16 %v30_v21 }
  0x30   :  { %v666_v31 = vmul.f32 %v634_v24, %v378_v25  ;;  %v636_v36 = vsub.f32 2.0, %v604_v34  ;;  %v380_v38 = vld [vmem:[%s2398_s3 + $0x78] sm:$0xff]  ;;  %v605_v39 = vld [vmem:[%s2399_s4 + $0x80] sm:$0xff]  ;;  %v74_v41 = vunpack.c.h.s8.bf16 %v42_v22  ;;  %v53_v42 = vunpack.c.l.s8.bf16 %v33_v37  ;;  %v606_v46 = vld [vmem:[%s2399_s4 + $0x88] sm:$0xff] }
  0x31   :  { %v667_v35 = vmul.f32 %v635_v32, %v379_v33  ;;  %v637_v44 = vsub.f32 2.0, %v605_v39  ;;  %v381_v45 = vld [vmem:[%s2398_s3 + $0x80] sm:$0xff]  ;;  %v638_v49 = vsub.f32 2.0, %v606_v46  ;;  %v382_v50 = vld [vmem:[%s2398_s3 + $0x88] sm:$0xff]  ;;  %v607_v51 = vld [vmem:[%s2399_s4 + $0x90] sm:$0xff]  ;;  %v55_v53 = vunpack.c.h.s8.bf16 %v33_v37 }
  0x32   :  { %v668_v43 = vmul.f32 %v636_v36, %v380_v38  ;;  %v32_v47 = vld [vmem:[%s2395_s0 + $0x20] sm:$0xff]  ;;  %v639_v55 = vsub.f32 2.0, %v607_v51  ;;  %v383_v56 = vld [vmem:[%s2398_s3 + $0x90] sm:$0xff]  ;;  %v608_v57 = vld [vmem:[%s2399_s4 + $0x98] sm:$0xff]  ;;  %vm981_vm0 = vcmask 64512  }
  0x33   :  { %811 = vperm.xlu1 %1727, %v665_v23   ;;  %459 = vperm.xlu0 %1726, %v377_v19   ;;  %v669_v48 = vmul.f32 %v637_v44, %v381_v45  ;;  %v52_v52 = vunpack.c.l.s8.bf16 %v32_v47  ;;  %v670_v54 = vmul.f32 %v638_v49, %v382_v50  ;;  %v640_v59 = vsub.f32 2.0, %v608_v57  ;;  %v35_v60 = vld [vmem:[%s2395_s0 + $0x38] sm:$0xff]  ;;  %v609_v62 = vld [vmem:[%s2399_s4 + $0xa0] sm:$0xff]  ;;  %v610_v4 = vld [vmem:[%s2399_s4 + $0xa8] sm:$0xff] }
  0x34   :  { %253 = vmatmul.mubr.bf16.gmra.mxu0 %v48_v27  ;;  %349 = vmatmul.mubr.bf16.gmra.mxu1 %v72_v28  ;;  %v671_v58 = vmul.f32 %v639_v55, %v383_v56  ;;  %v384_v61 = vld [vmem:[%s2398_s3 + $0x98] sm:$0xff]  ;;  %v54_v63 = vunpack.c.h.s8.bf16 %v32_v47  ;;  %v57_v0 = vunpack.c.l.s8.bf16 %v35_v60  ;;  %v641_v2 = vsub.f32 2.0, %v609_v62  ;;  %v385_v3 = vld [vmem:[%s2398_s3 + $0xa0] sm:$0xff]  ;;  %v34_v5 = vld [vmem:[%s2395_s0 + $0x30] sm:$0xff] }
  0x35   :  { %260 = vmatprep.mubr.bf16.mxu0 %v51_v29  ;;  %356 = vmatprep.mubr.bf16.mxu1 %v75_v30  ;;  %v672_v1 = vmul.f32 %v640_v59, %v384_v61  ;;  %v642_v7 = vsub.f32 2.0, %v610_v4  ;;  %v386_v8 = vld [vmem:[%s2398_s3 + $0xa8] sm:$0xff]  ;;  %v611_v9 = vld [vmem:[%s2399_s4 + $0xb0] sm:$0xff]  ;;  %v56_v10 = vunpack.c.l.s8.bf16 %v34_v5  ;;  %v59_v11 = vunpack.c.h.s8.bf16 %v35_v60  ;;  %v612_v15 = vld [vmem:[%s2399_s4 + $0xb8] sm:$0xff] }
  0x36   :  { %v673_v6 = vmul.f32 %v641_v2, %v385_v3  ;;  %v643_v13 = vsub.f32 2.0, %v611_v9  ;;  %v387_v14 = vld [vmem:[%s2398_s3 + $0xb0] sm:$0xff]  ;;  %v644_v17 = vsub.f32 2.0, %v612_v15  ;;  %v37_v18 = vld [vmem:[%s2395_s0 + $0x48] sm:$0xff]  ;;  %v388_v19 = vld [vmem:[%s2398_s3 + $0xb8] sm:$0xff]  ;;  %v58_v21 = vunpack.c.h.s8.bf16 %v34_v5 }
  0x37   :  { %816 = vperm.xlu1 %1727, %v666_v31   ;;  %464 = vperm.xlu0 %1726, %v378_v25   ;;  %v674_v12 = vmul.f32 %v642_v7, %v386_v8  ;;  %v613_v20 = vld [vmem:[%s2399_s4 + $0xc0] sm:$0xff]  ;;  %v61_v22 = vunpack.c.l.s8.bf16 %v37_v18  ;;  %v614_v26 = vld [vmem:[%s2399_s4 + $0xc8] sm:$0xff]  ;;  %v615_v31 = vld [vmem:[%s2399_s4 + $0xd0] sm:$0xff] }
  0x38   :  { %v675_v16 = vmul.f32 %v643_v13, %v387_v14  ;;  %v676_v23 = vmul.f32 %v644_v17, %v388_v19  ;;  %v645_v24 = vsub.f32 2.0, %v613_v20  ;;  %v389_v25 = vld [vmem:[%s2398_s3 + $0xc0] sm:$0xff]  ;;  %v646_v29 = vsub.f32 2.0, %v614_v26  ;;  %v390_v30 = vld [vmem:[%s2398_s3 + $0xc8] sm:$0xff]  ;;  %v391_v36 = vld [vmem:[%s2398_s3 + $0xd0] sm:$0xff] }
  0x39   :  { %v36_v27 = vld [vmem:[%s2395_s0 + $0x40] sm:$0xff]  ;;  %v616_v37 = vld [vmem:[%s2399_s4 + $0xd8] sm:$0xff]  ;;  %v38_v49 = vld [vmem:[%s2395_s0 + $0x50] sm:$0xff] }
  0x3a   :  { %v677_v28 = vmul.f32 %v645_v24, %v389_v25  ;;  %v60_v32 = vunpack.c.l.s8.bf16 %v36_v27  ;;  %v678_v34 = vmul.f32 %v646_v29, %v390_v30  ;;  %v648_v39 = vsub.f32 2.0, %v616_v37  ;;  %v393_v47 = vld [vmem:[%s2398_s3 + $0xe0] sm:$0xff]  ;;  %v395_v59 = vld [vmem:[%s2398_s3 + $0xf0] sm:$0xff]  ;;  %v620_v60 = vld [vmem:[%s2399_s4 + $0xf8] sm:$0xff] }
  0x3b   :  { %821 = vperm.xlu1 %1727, %v667_v35   ;;  %469 = vperm.xlu0 %1726, %v379_v33   ;;  %v63_v33 = vunpack.c.h.s8.bf16 %v37_v18  ;;  %v647_v35 = vsub.f32 2.0, %v615_v31  ;;  %v64_v55 = vunpack.c.l.s8.bf16 %v38_v49  ;;  %v652_v62 = vsub.f32 2.0, %v620_v60 }
  0x3c   :  { %261 = vmatmul.mubr.bf16.gmra.mxu0 %v50_v40  ;;  %357 = vmatmul.mubr.bf16.gmra.mxu1 %v74_v41  ;;  %v39_v40 = vld [vmem:[%s2395_s0 + $0x58] sm:$0xff] }
  0x3d   :  { %268 = vmatprep.mubr.bf16.mxu0 %v53_v42  ;;  %v392_v41 = vld [vmem:[%s2398_s3 + $0xd8] sm:$0xff]  ;;  %v617_v42 = vld [vmem:[%s2399_s4 + $0xe0] sm:$0xff]  ;;  %v65_v44 = vunpack.c.l.s8.bf16 %v39_v40 }
  0x3e   :  { %v649_v46 = vsub.f32 2.0, %v617_v42 }
  0x3f   :  { %826 = vperm.xlu1 %1727, %v668_v43   ;;  %474 = vperm.xlu0 %1726, %v380_v38   ;;  %v679_v38 = vmul.f32 %v647_v35, %v391_v36  ;;  %v62_v43 = vunpack.c.h.s8.bf16 %v36_v27 }
  0x43   :  { %831 = vperm.xlu1 %1727, %v669_v48   ;;  %479 = vperm.xlu0 %1726, %v381_v45   ;;  %v680_v45 = vmul.f32 %v648_v39, %v392_v41  ;;  %v618_v48 = vld [vmem:[%s2399_s4 + $0xe8] sm:$0xff] }
  0x44   :  { %269 = vmatmul.mubr.bf16.gmra.mxu0 %v52_v52  ;;  %v650_v51 = vsub.f32 2.0, %v618_v48  ;;  %v973_v52 = vld [vmem:[%s2400_s5] sm:$0xff]  ;;  %v1496_v39 = vld [vmem:[%s2397_s2 + $0x8] sm:$0xff]  }
  0x45   :  { %276 = vmatprep.mubr.bf16.mxu0 %v55_v53  ;;  %v394_v53 = vld [vmem:[%s2398_s3 + $0xe8] sm:$0xff]  ;;  %1656 = vmatprep.subr.mxu1 %v973_v52 }
  0x46   :  { %1657 = vmatpush3.msra.mxu1 %v973_v52  ;;  %v682_v57 = vmul.f32 %v650_v51, %v394_v53 }
  0x47   :  { %836 = vperm.xlu1 %1727, %v670_v54   ;;  %484 = vperm.xlu0 %1726, %v382_v50   ;;  %v681_v50 = vmul.f32 %v649_v46, %v393_v47  ;;  %v619_v54 = vld [vmem:[%s2399_s4 + $0xf0] sm:$0xff] }
  0x4b   :  { %841 = vperm.xlu1 %1727, %v671_v58   ;;  %489 = vperm.xlu0 %1726, %v383_v56   ;;  %v67_v56 = vunpack.c.h.s8.bf16 %v39_v40  ;;  %v651_v58 = vsub.f32 2.0, %v619_v54  ;;  %v1439_v54 = vunpack.c.h.bf16 %v1496_v39 }
  0x4c   :  { %277 = vmatmul.mubr.bf16.gmra.mxu0 %v54_v63  ;;  %v396_v63 = vld [vmem:[%s2398_s3 + $0xf8] sm:$0xff] }
  0x4d   :  { %284 = vmatprep.mubr.bf16.mxu0 %v57_v0  ;;  %v66_v0 = vunpack.c.h.s8.bf16 %v38_v49 }
  0x4f   :  { %846 = vperm.xlu1 %1727, %v672_v1   ;;  %494 = vperm.xlu0 %1726, %v384_v61   ;;  %v683_v61 = vmul.f32 %v651_v58, %v395_v59  ;;  %v684_v1 = vmul.f32 %v652_v62, %v396_v63  ;;  %v1497_v58 = vld [vmem:[%s2397_s2 + $0x10] sm:$0xff]  }
  0x53   :  { %851 = vperm.xlu1 %1727, %v673_v6   ;;  %499 = vperm.xlu0 %1726, %v385_v3  }
  0x54   :  { %285 = vmatmul.mubr.bf16.gmra.mxu0 %v56_v10 }
  0x55   :  { %292 = vmatprep.mubr.bf16.mxu0 %v59_v11 }
  0x57   :  { %856 = vperm.xlu1 %1727, %v674_v12   ;;  %504 = vperm.xlu0 %1726, %v386_v8  }
  0x5b   :  { %861 = vperm.xlu1 %1727, %v675_v16   ;;  %509 = vperm.xlu0 %1726, %v387_v14  }
  0x5c   :  { %293 = vmatmul.mubr.bf16.gmra.mxu0 %v58_v21 }
  0x5d   :  { %300 = vmatprep.mubr.bf16.mxu0 %v61_v22 }
  0x5f   :  { %866 = vperm.xlu1 %1727, %v676_v23   ;;  %514 = vperm.xlu0 %1726, %v388_v19  }
  0x63   :  { %871 = vperm.xlu1 %1727, %v677_v28   ;;  %519 = vperm.xlu0 %1726, %v389_v25   ;;  %v1433_v28 = vld [vmem:[%s2397_s2] sm:$0xff]  }
  0x64   :  { %301 = vmatmul.mubr.bf16.gmra.mxu0 %v60_v32 }
  0x65   :  { %308 = vmatprep.mubr.bf16.mxu0 %v63_v33 }
  0x67   :  { %876 = vperm.xlu1 %1727, %v678_v34   ;;  %524 = vperm.xlu0 %1726, %v390_v30   ;;  %v1434_v30 = vunpack.c.l.bf16 %v1433_v28 }
  0x6b   :  { %881 = vperm.xlu1 %1727, %v679_v38   ;;  %529 = vperm.xlu0 %1726, %v391_v36   ;;  %v1435_v36 = vunpack.c.h.bf16 %v1433_v28 }
  0x6c   :  { %309 = vmatmul.mubr.bf16.gmra.mxu0 %v62_v43 }
  0x6d   :  { %316 = vmatprep.mubr.bf16.mxu0 %v65_v44 }
  0x6f   :  { %886 = vperm.xlu1 %1727, %v680_v45   ;;  %534 = vperm.xlu0 %1726, %v392_v41  }
  0x73   :  { %891 = vperm.xlu1 %1727, %v681_v50   ;;  %539 = vperm.xlu0 %1726, %v393_v47   ;;  %v1438_v47 = vunpack.c.l.bf16 %v1496_v39 }
  0x74   :  { %317 = vmatmul.mubr.bf16.gmra.mxu0 %v64_v55 }
  0x75   :  { %324 = vmatprep.mubr.bf16.mxu0 %v67_v56 }
  0x77   :  { %896 = vperm.xlu1 %1727, %v682_v57   ;;  %544 = vperm.xlu0 %1726, %v394_v53  }
  0x7b   :  { %901 = vperm.xlu1 %1727, %v683_v61   ;;  %549 = vperm.xlu0 %1726, %v395_v59  }
  0x7c   :  { %325 = vmatmul.mubr.bf16.gmra.mxu0 %v66_v0  ;;  %v1442_v0 = vunpack.c.l.bf16 %v1497_v58 }
  0x7d   :  { %v405_v2 = vpop.permute.xlu1 %404  ;;  %v400_v3 = vpop.permute.xlu0 %399 }
  0x7f   :  { %906 = vperm.xlu1 %1727, %v684_v1   ;;  %554 = vperm.xlu0 %1726, %v396_v63  }
  0x82   :  { %v757_v4 = vpop.permute.xlu1 %756  ;;  %v752_v5 = vpop.permute.xlu0 %751 }
  0x83   :  { %v909_v37 = vmul.f32 %v1434_v30, %v752_v5  ;;  %v910_v46 = vmul.f32 %v1435_v36, %v757_v4 }
  0x86   :  { %v762_v6 = vpop.permute.xlu1 %761  ;;  %v410_v7 = vpop.permute.xlu0 %409 }
  0x87   :  { %v911_v53 = vmul.f32 %v1438_v47, %v762_v6 }
  0x8a   :  { %v767_v8 = vpop.permute.xlu1 %766  ;;  %v415_v9 = vpop.permute.xlu0 %414 }
  0x8b   :  { %v912_v63 = vmul.f32 %v1439_v54, %v767_v8  ;;  %v1498_v8 = vld [vmem:[%s2397_s2 + $0x18] sm:$0xff]  }
  0x8e   :  { %v2101_v10 = vpop.permute.xlu1 %771  ;;  %v2103_v11 = vpop.permute.xlu0 %419 }
  0x8f   :  { %v913_v28 = vmul.f32 %v1442_v0, %v2101_v10 }
  0x92   :  { %v2105_v12 = vpop.permute.xlu1 %776  ;;  %v2107_v13 = vpop.permute.xlu0 %424 }
  0x96   :  { %v2109_v14 = vpop.permute.xlu1 %781  ;;  %v2111_v15 = vpop.permute.xlu0 %429 }
  0x9a   :  { %v2113_v16 = vpop.permute.xlu1 %786  ;;  %v2115_v17 = vpop.permute.xlu0 %434 }
  0x9e   :  { %v2117_v18 = vpop.permute.xlu1 %791  ;;  %v2119_v19 = vpop.permute.xlu0 %439 }
  0xa2   :  { %v2121_v20 = vpop.permute.xlu1 %796  ;;  %v2123_v21 = vpop.permute.xlu0 %444 }
  0xa6   :  { %v2125_v22 = vpop.permute.xlu1 %801  ;;  %v2127_v23 = vpop.permute.xlu0 %449 }
  0xaa   :  { %v2129_v24 = vpop.permute.xlu1 %806  ;;  %v2131_v25 = vpop.permute.xlu0 %454 }
  0xae   :  { %v2133_v26 = vpop.permute.xlu1 %811  ;;  %v2135_v27 = vpop.permute.xlu0 %459 }
  0xb2   :  { %v2140_v31 = vpop.permute.xlu1 %816  ;;  %v2142_v32 = vpop.permute.xlu0 %464 }
  0xb6   :  { %v2147_v41 = vpop.permute.xlu1 %821  ;;  %v2149_v42 = vpop.permute.xlu0 %469 }
  0xba   :  { %v2152_v55 = vpop.permute.xlu1 %826  ;;  %v2154_v56 = vpop.permute.xlu0 %474 }
  0xbe   :  { %v2163_v4 = vpop.permute.xlu0 %479 }
  0xc2   :  { %v2174_v39 = vpop.permute.xlu0 %484 }
  0xe4   :  { %v1527_v29 = vpop.f32.mrf.mxu0 }
  0xe6   :  { %v1528_v33 = vpop.f32.mrf.mxu0 }
  0xe7   :  { %v1529_v34 = vadd.f32 %v1528_v33, %v1527_v29  ;;  %v1443_v29 = vunpack.c.h.bf16 %v1497_v58 }
  0xe8   :  { %v1530_v35 = vpop.f32.mrf.mxu0 }
  0xe9   :  { %v557_v38 = vmul.f32 %v1529_v34, %v400_v3  ;;  %v2161_v3 = vpop.permute.xlu1 %831  ;;  %v914_v36 = vmul.f32 %v1443_v29, %v2105_v12  ;;  %v1499_v12 = vld [vmem:[%s2397_s2 + $0x20] sm:$0xff]  }
  0xea   :  { %v1531_v40 = vpop.f32.mrf.mxu0 }
  0xeb   :  { %v941_v43 = vadd.f32 %v909_v37, %v557_v38  ;;  %v1532_v44 = vadd.f32 %v1531_v40, %v1530_v35  ;;  %v1446_v37 = vunpack.c.l.bf16 %v1498_v8 }
  0xec   :  { %v1533_v45 = vpop.f32.mrf.mxu0 }
  0xed   :  { %v558_v48 = vmul.f32 %v1532_v44, %v405_v2  ;;  %1658 = vmatprep.mubr.msk.f32.mxu1 %vm981_vm0, %v941_v43  ;;  %v2172_v38 = vpop.permute.xlu1 %836 }
  0xee   :  { %v1534_v49 = vpop.f32.mrf.mxu0 }
  0xef   :  { %v942_v50 = vadd.f32 %v910_v46, %v558_v48  ;;  %v1535_v51 = vadd.f32 %v1534_v49, %v1533_v45  ;;  %v915_v45 = vmul.f32 %v1446_v37, %v2109_v14  ;;  %v1447_v46 = vunpack.c.h.bf16 %v1498_v8 }
  0xf0   :  { %v1536_v52 = vpop.f32.mrf.mxu0  ;;  %v1450_v14 = vunpack.c.l.bf16 %v1499_v12 }
  0xf1   :  { %v559_v57 = vmul.f32 %v1535_v51, %v410_v7  ;;  %1659 = vmatmul.mubr.msk.f32.vlgmr.msra.gmra.mxu1 %vm981_vm0, %v942_v50  ;;  %v2184_v49 = vpop.permute.xlu1 %841 }
  0xf2   :  { %v1537_v59 = vpop.f32.mrf.mxu0 }
  0xf3   :  { %v943_v60 = vadd.f32 %v911_v53, %v559_v57  ;;  %v1538_v61 = vadd.f32 %v1537_v59, %v1536_v52  ;;  %v916_v53 = vmul.f32 %v1447_v46, %v2113_v16  ;;  %v1500_v16 = vld [vmem:[%s2397_s2 + $0x28] sm:$0xff]  }
  0xf4   :  { %v1539_v62 = vpop.f32.mrf.mxu0 }
  0xf5   :  { %v560_v1 = vmul.f32 %v1538_v61, %v415_v9  ;;  %1661 = vmatprep.mubr.msk.f32.mxu1 %vm981_vm0, %v943_v60  ;;  %v917_v60 = vmul.f32 %v1450_v14, %v2117_v18  ;;  %v1451_v61 = vunpack.c.h.bf16 %v1499_v12  ;;  %v1454_v18 = vunpack.c.l.bf16 %v1500_v16 }
  0xf6   :  { %v1540_v2 = vpop.f32.mrf.mxu0 }
  0xf7   :  { %v944_v5 = vadd.f32 %v912_v63, %v560_v1  ;;  %v1541_v6 = vadd.f32 %v1540_v2, %v1539_v62  ;;  %v2192_v62 = vpop.permute.xlu1 %846 }
  0xf8   :  { %v1542_v7 = vpop.f32.mrf.mxu0 }
  0xf9   :  { %v561_v30 = vmul.f32 %v1541_v6, %v2103_v11  ;;  %1662 = vmatmul.mubr.msk.f32.gmra.mxu1 %vm981_vm0, %v944_v5  ;;  %v918_v6 = vmul.f32 %v1451_v61, %v2121_v20 }
  0xfa   :  { %v1543_v9 = vpop.f32.mrf.mxu0 }
  0xfb   :  { %v945_v33 = vadd.f32 %v913_v28, %v561_v30  ;;  %v1544_v34 = vadd.f32 %v1543_v9, %v1542_v7  ;;  %v2204_v29 = vpop.permute.xlu1 %851  ;;  %v2208_v9 = vpop.f32.mrf.mxu1 }
  0xfc   :  { %v1545_v35 = vpop.f32.mrf.mxu0 }
  0xfd   :  { %v562_v10 = vmul.f32 %v1544_v34, %v2107_v13  ;;  %1664 = vmatprep.mubr.msk.f32.mxu1 %vm981_vm0, %v945_v33  ;;  %v2186_v13 = vpop.permute.xlu0 %489  ;;  %v919_v34 = vmul.f32 %v1454_v18, %v2125_v22 }
  0xfe   :  { %v1546_v11 = vpop.f32.mrf.mxu0 }
  0xff   :  { %v946_v40 = vadd.f32 %v914_v36, %v562_v10  ;;  %v1547_v43 = vadd.f32 %v1546_v11, %v1545_v35  ;;  %v1455_v35 = vunpack.c.h.bf16 %v1500_v16  ;;  %v2216_v11 = vpop.f32.mrf.mxu1 }
 0x100   :  { %v1548_v44 = vpop.f32.mrf.mxu0 }
 0x101   :  { %v563_v47 = vmul.f32 %v1547_v43, %v2111_v15  ;;  %1665 = vmatmul.mubr.msk.f32.gmra.mxu1 %vm981_vm0, %v946_v40  ;;  %v2194_v63 = vpop.permute.xlu0 %494  ;;  %v920_v43 = vmul.f32 %v1455_v35, %v2129_v24 }
 0x102   :  { %v1549_v48 = vpop.f32.mrf.mxu0 }
 0x103   :  { %v947_v50 = vadd.f32 %v915_v45, %v563_v47  ;;  %v1550_v51 = vadd.f32 %v1549_v48, %v1548_v44  ;;  %v2219_v45 = vpop.permute.xlu1 %856  ;;  %v2225_v48 = vpop.f32.mrf.mxu1 }
 0x104   :  { %v1551_v52 = vpop.f32.mrf.mxu0 }
 0x105   :  { %v564_v54 = vmul.f32 %v1550_v51, %v2115_v17  ;;  %1667 = vmatprep.mubr.msk.f32.mxu1 %vm981_vm0, %v947_v50 }
 0x106   :  { %v1552_v15 = vpop.f32.mrf.mxu0 }
 0x107   :  { %v948_v57 = vadd.f32 %v916_v53, %v564_v54  ;;  %v1553_v58 = vadd.f32 %v1552_v15, %v1551_v52  ;;  %v1502_v53 = vld [vmem:[%s2397_s2 + $0x38] sm:$0xff]   ;;  %v2233_v14 = vpop.permute.xlu1 %861 }
 0x108   :  { %v1554_v59 = vpop.f32.mrf.mxu0 }
 0x109   :  { %v565_v0 = vmul.f32 %v1553_v58, %v2119_v19  ;;  %1668 = vmatmul.mubr.msk.f32.gmra.mxu1 %vm981_vm0, %v948_v57  ;;  %v2206_v19 = vpop.permute.xlu0 %499  ;;  %v2237_v58 = vpop.f32.mrf.mxu1 }
 0x10a   :  { %v1555_v17 = vpop.f32.mrf.mxu0 }
 0x10b   :  { %v949_v1 = vadd.f32 %v917_v60, %v565_v0  ;;  %v1556_v2 = vadd.f32 %v1555_v17, %v1554_v59  ;;  %v1462_v60 = vunpack.c.l.bf16 %v1502_v53  ;;  %v2242_v17 = vpop.f32.mrf.mxu1 }
 0x10c   :  { %v1557_v5 = vpop.f32.mrf.mxu0 }
 0x10d   :  { %v566_v7 = vmul.f32 %v1556_v2, %v2123_v21  ;;  %1670 = vmatprep.mubr.msk.f32.mxu1 %vm981_vm0, %v949_v1  ;;  %v1501_v21 = vld [vmem:[%s2397_s2 + $0x30] sm:$0xff]   ;;  %v2221_v22 = vpop.permute.xlu0 %504  ;;  %v923_v2 = vmul.f32 %v1462_v60, %v2147_v41 }
 0x10e   :  { %v1558_v28 = vpop.f32.mrf.mxu0  ;;  %v1458_v44 = vunpack.c.l.bf16 %v1501_v21  ;;  %v1459_v52 = vunpack.c.h.bf16 %v1501_v21 }
 0x10f   :  { %v950_v30 = vadd.f32 %v918_v6, %v566_v7  ;;  %v1559_v8 = vadd.f32 %v1558_v28, %v1557_v5  ;;  %v1463_v5 = vunpack.c.h.bf16 %v1502_v53  ;;  %v2245_v6 = vpop.permute.xlu1 %866 }
 0x110   :  { %v1560_v33 = vpop.f32.mrf.mxu0  ;;  %v921_v51 = vmul.f32 %v1458_v44, %v2133_v26  ;;  %v922_v26 = vmul.f32 %v1459_v52, %v2140_v31 }
 0x111   :  { %v567_v20 = vmul.f32 %v1559_v8, %v2127_v23  ;;  %1671 = vmatmul.mubr.msk.f32.gmra.mxu1 %vm981_vm0, %v950_v30  ;;  %v2235_v54 = vpop.permute.xlu0 %509  ;;  %v2254_v8 = vpop.f32.mrf.mxu1  ;;  %v924_v41 = vmul.f32 %v1463_v5, %v2152_v55 }
 0x112   :  { %v1561_v36 = vpop.f32.mrf.mxu0 }
 0x113   :  { %v951_v37 = vadd.f32 %v919_v34, %v567_v20  ;;  %v1562_v10 = vadd.f32 %v1561_v36, %v1560_v33  ;;  %v2259_v20 = vpop.permute.xlu1 %871 }
 0x114   :  { %v1563_v40 = vpop.f32.mrf.mxu0 }
 0x115   :  { %v568_v23 = vmul.f32 %v1562_v10, %v2131_v25  ;;  %1673 = vmatprep.mubr.msk.f32.mxu1 %vm981_vm0, %v951_v37  ;;  %v2247_v18 = vpop.permute.xlu0 %514  ;;  %v2263_v10 = vpop.f32.mrf.mxu1 }
 0x116   :  { %v1564_v46 = vpop.f32.mrf.mxu0 }
 0x117   :  { %v952_v47 = vadd.f32 %v920_v43, %v568_v23  ;;  %v1565_v12 = vadd.f32 %v1564_v46, %v1563_v40 }
 0x118   :  { %v1566_v50 = vpop.f32.mrf.mxu0 }
 0x119   :  { %v569_v24 = vmul.f32 %v1565_v12, %v2135_v27  ;;  %1674 = vmatmul.mubr.msk.f32.gmra.mxu1 %vm981_vm0, %v952_v47  ;;  %v2261_v21 = vpop.permute.xlu0 %519  ;;  %v2271_v12 = vpop.f32.mrf.mxu1 }
 0x11a   :  { %v1567_v25 = vpop.f32.mrf.mxu0 }
 0x11b   :  { %v953_v15 = vadd.f32 %v921_v51, %v569_v24  ;;  %v1568_v57 = vadd.f32 %v1567_v25, %v1566_v50  ;;  %v2274_v24 = vpop.permute.xlu1 %876 }
 0x11c   :  { %v1569_v59 = vpop.f32.mrf.mxu0 }
 0x11d   :  { %v570_v27 = vmul.f32 %v1568_v57, %v2142_v32  ;;  %1676 = vmatprep.mubr.msk.f32.mxu1 %vm981_vm0, %v953_v15  ;;  %v1503_v32 = vld [vmem:[%s2397_s2 + $0x40] sm:$0xff]   ;;  %v2280_v57 = vpop.f32.mrf.mxu1 }
 0x11e   :  { %v1570_v61 = vpop.f32.mrf.mxu0  ;;  %v1466_v34 = vunpack.c.l.bf16 %v1503_v32  ;;  %v1467_v44 = vunpack.c.h.bf16 %v1503_v32 }
 0x11f   :  { %v954_v0 = vadd.f32 %v922_v26, %v570_v27  ;;  %v1571_v16 = vadd.f32 %v1570_v61, %v1569_v59  ;;  %v1505_v27 = vld [vmem:[%s2397_s2 + $0x50] sm:$0xff]   ;;  %v2288_v61 = vpop.permute.xlu1 %881 }
 0x120   :  { %v1572_v1 = vpop.f32.mrf.mxu0  ;;  %v925_v43 = vmul.f32 %v1466_v34, %v2161_v3  ;;  %v926_v51 = vmul.f32 %v1467_v44, %v2172_v38  ;;  %v2276_v3 = vpop.permute.xlu0 %524  ;;  %v1475_v34 = vunpack.c.h.bf16 %v1505_v27 }
 0x121   :  { %v571_v31 = vmul.f32 %v1571_v16, %v2149_v42  ;;  %1677 = vmatmul.mubr.msk.f32.gmra.mxu1 %vm981_vm0, %v954_v0 }
 0x122   :  { %v1573_v7 = vpop.f32.mrf.mxu0 }
 0x123   :  { %v955_v28 = vadd.f32 %v923_v2, %v571_v31  ;;  %v1574_v30 = vadd.f32 %v1573_v7, %v1572_v1  ;;  %v2292_v2 = vpop.f32.mrf.mxu1  ;;  %v1474_v31 = vunpack.c.l.bf16 %v1505_v27 }
 0x124   :  { %v1575_v33 = vpop.f32.mrf.mxu0  ;;  %v2290_v0 = vpop.permute.xlu0 %529 }
 0x125   :  { %v572_v35 = vmul.f32 %v1574_v30, %v2154_v56  ;;  %1679 = vmatprep.mubr.msk.f32.mxu1 %vm981_vm0, %v955_v28  ;;  %v1504_v56 = vld [vmem:[%s2397_s2 + $0x48] sm:$0xff]   ;;  %v2297_v30 = vpop.f32.mrf.mxu1 }
 0x126   :  { %v1576_v42 = vpop.f32.mrf.mxu0  ;;  %v1470_v52 = vunpack.c.l.bf16 %v1504_v56  ;;  %v1471_v60 = vunpack.c.h.bf16 %v1504_v56 }
 0x127   :  { %v956_v36 = vadd.f32 %v924_v41, %v572_v35  ;;  %v1577_v37 = vadd.f32 %v1576_v42, %v1575_v33  ;;  %v929_v41 = vmul.f32 %v1474_v31, %v2204_v29  ;;  %v2300_v35 = vpop.permute.xlu1 %886 }
 0x128   :  { %v1578_v40 = vpop.f32.mrf.mxu0  ;;  %v927_v26 = vmul.f32 %v1470_v52, %v2184_v49  ;;  %v928_v49 = vmul.f32 %v1471_v60, %v2192_v62  ;;  %v535_v42 = vpop.permute.xlu0 %534  ;;  %v1506_v62 = vld [vmem:[%s2397_s2 + $0x58] sm:$0xff]   ;;  %v1601_v52 = vadd.f32 %v2216_v11, %v2208_v9  ;;  %v1604_v60 = vadd.f32 %v2237_v58, %v2225_v48 }
 0x129   :  { %v573_v55 = vmul.f32 %v1577_v37, %v2163_v4  ;;  %1680 = vmatmul.mubr.msk.f32.gmra.mxu1 %vm981_vm0, %v956_v36  ;;  %v1478_v29 = vunpack.c.l.bf16 %v1506_v62 }
 0x12a   :  { %v1579_v23 = vpop.f32.mrf.mxu0  ;;  %v581_v11 = vmul.f32 %v1601_v52, %v2261_v21  ;;  %v582_v58 = vmul.f32 %v1604_v60, %v2276_v3  ;;  %v1509_v21 = vld [vmem:[%s2397_s2 + $0x70] sm:$0xff]  }
 0x12b   :  { %v957_v46 = vadd.f32 %v925_v43, %v573_v55  ;;  %v1580_v47 = vadd.f32 %v1579_v23, %v1578_v40  ;;  %v1615_v43 = vpop.f32.mrf.mxu1  ;;  %v930_v55 = vmul.f32 %v1475_v34, %v2219_v45  ;;  %v931_v45 = vmul.f32 %v1478_v29, %v2233_v14 }
 0x12c   :  { %v1581_v50 = vpop.f32.mrf.mxu0  ;;  %v1607_v14 = vadd.f32 %v2254_v8, %v2242_v17  ;;  %v1610_v17 = vadd.f32 %v2271_v12, %v2263_v10  ;;  %v1510_v12 = vld [vmem:[%s2397_s2 + $0x78] sm:$0xff]  }
 0x12d   :  { %v574_v4 = vmul.f32 %v1580_v47, %v2174_v39  ;;  %1682 = vmatprep.mubr.msk.f32.mxu1 %vm981_vm0, %v957_v46  ;;  %v892_v46 = vpop.permute.xlu1 %891  ;;  %v540_v47 = vpop.permute.xlu0 %539 }
 0x12e   :  { %v1582_v53 = vpop.f32.mrf.mxu0  ;;  %v583_v31 = vmul.f32 %v1607_v14, %v2290_v0  ;;  %v584_v10 = vmul.f32 %v1610_v17, %v535_v42 }
 0x12f   :  { %v958_v25 = vadd.f32 %v926_v51, %v574_v4  ;;  %v1583_v15 = vadd.f32 %v1582_v53, %v1581_v50  ;;  %v1617_v4 = vpop.f32.mrf.mxu1 }
 0x130   :  { %v1584_v59 = vpop.f32.mrf.mxu0 }
 0x131   :  { %v575_v38 = vmul.f32 %v1583_v15, %v2186_v13  ;;  %1683 = vmatmul.mubr.msk.f32.gmra.mxu1 %vm981_vm0, %v958_v25  ;;  %v1479_v25 = vunpack.c.h.bf16 %v1506_v62  ;;  %v1618_v27 = vpop.f32.mrf.mxu1  ;;  %v545_v48 = vpop.permute.xlu0 %544 }
 0x132   :  { %v1585_v39 = vpop.f32.mrf.mxu0 }
 0x133   :  { %v959_v16 = vadd.f32 %v927_v26, %v575_v38  ;;  %v1586_v1 = vadd.f32 %v1585_v39, %v1584_v59  ;;  %v1508_v26 = vld [vmem:[%s2397_s2 + $0x68] sm:$0xff]  }
 0x134   :  { %v1587_v5 = vpop.f32.mrf.mxu0 }
 0x135   :  { %v576_v13 = vmul.f32 %v1586_v1, %v2194_v63  ;;  %1685 = vmatprep.mubr.msk.f32.mxu1 %vm981_vm0, %v959_v16  ;;  %v897_v16 = vpop.permute.xlu1 %896 }
 0x136   :  { %v1588_v32 = vpop.f32.mrf.mxu0 }
 0x137   :  { %v960_v7 = vadd.f32 %v928_v49, %v576_v13  ;;  %v1589_v28 = vadd.f32 %v1588_v32, %v1587_v5  ;;  %v1486_v49 = vunpack.c.l.bf16 %v1508_v26  ;;  %v1620_v13 = vpop.f32.mrf.mxu1  ;;  %v1487_v32 = vunpack.c.h.bf16 %v1508_v26 }
 0x138   :  { %v1590_v33 = vpop.f32.mrf.mxu0 }
 0x139   :  { %v577_v36 = vmul.f32 %v1589_v28, %v2206_v19  ;;  %1686 = vmatmul.mubr.msk.f32.gmra.mxu1 %vm981_vm0, %v960_v7  ;;  %v1507_v19 = vld [vmem:[%s2397_s2 + $0x60] sm:$0xff]   ;;  %v935_v3 = vmul.f32 %v1486_v49, %v2288_v61  ;;  %v1490_v7 = vunpack.c.l.bf16 %v1509_v21  ;;  %v902_v0 = vpop.permute.xlu1 %901  ;;  %v1621_v34 = vpop.f32.mrf.mxu1  ;;  %v1491_v61 = vunpack.c.h.bf16 %v1509_v21 }
 0x13a   :  { %v1591_v63 = vpop.f32.mrf.mxu0  ;;  %v1482_v15 = vunpack.c.l.bf16 %v1507_v19  ;;  %v1483_v39 = vunpack.c.h.bf16 %v1507_v19 }
 0x13b   :  { %v961_v37 = vadd.f32 %v929_v41, %v577_v36  ;;  %v1592_v40 = vadd.f32 %v1591_v63, %v1590_v33  ;;  %v550_v33 = vpop.permute.xlu0 %549  ;;  %v1619_v41 = vadd.f32 %v1618_v27, %v1617_v4  ;;  %v936_v36 = vmul.f32 %v1487_v32, %v2300_v35 }
 0x13c   :  { %v1593_v44 = vpop.f32.mrf.mxu0  ;;  %v933_v5 = vmul.f32 %v1482_v15, %v2259_v20  ;;  %v934_v20 = vmul.f32 %v1483_v39, %v2274_v24  ;;  %v937_v62 = vmul.f32 %v1490_v7, %v892_v46  ;;  %v1494_v63 = vunpack.c.l.bf16 %v1510_v12 }
 0x13d   :  { %v578_v56 = vmul.f32 %v1592_v40, %v2221_v22  ;;  %1688 = vmatprep.mubr.msk.f32.mxu1 %vm981_vm0, %v961_v37  ;;  %v968_v42 = vadd.f32 %v936_v36, %v584_v10  ;;  %v1622_v40 = vadd.f32 %v1621_v34, %v1620_v13 }
 0x13e   :  { %v1594_v23 = vpop.f32.mrf.mxu0  ;;  %v965_v8 = vadd.f32 %v933_v5, %v581_v11  ;;  %v966_v28 = vadd.f32 %v934_v20, %v582_v58  ;;  %v939_v29 = vmul.f32 %v1494_v63, %v902_v0 }
 0x13f   :  { %v962_v50 = vadd.f32 %v930_v55, %v578_v56  ;;  %v1595_v51 = vadd.f32 %v1594_v23, %v1593_v44  ;;  %v587_v55 = vmul.f32 %v1619_v41, %v550_v33  ;;  %v907_v56 = vpop.permute.xlu1 %906  ;;  %v555_v23 = vpop.permute.xlu0 %554 }
 0x140   :  { %v1596_v53 = vpop.f32.mrf.mxu0  ;;  %v588_v19 = vmul.f32 %v1622_v40, %v555_v23 }
 0x141   :  { %v579_v22 = vmul.f32 %v1595_v51, %v2235_v54  ;;  %1689 = vmatmul.mubr.msk.f32.gmra.mxu1 %vm981_vm0, %v962_v50  ;;  %v932_v54 = vmul.f32 %v1479_v25, %v2245_v6  ;;  %v971_v46 = vadd.f32 %v939_v29, %v587_v55  ;;  %v2358_v51 = vld [vmem:[%s2401_s6] ss:$0 sm:$0xff]  ;;  %s1767_s6 = smov [#allocation2]  }
 0x142   :  { %v1597_v59 = vpop.f32.mrf.mxu0  ;;  %s1372_s30 = sshll.u32 %s1767_s6, 4  ;;  %s1373_s30 = int_to_ptr.vmem [resolvable:$true] %s1372_s30 }
 0x143   :  { %v963_v38 = vadd.f32 %v931_v45, %v579_v22  ;;  %v1598_v9 = vadd.f32 %v1597_v59, %v1596_v53  ;;  %s1744_s8 = scalar_lea.vmem %s1373_s30, 4096  ;;  %p1749_p1 = scmp.lt.s32.totalorder %s1373_s30, %s1373_s30 }
 0x144   :  { %p1745_p0 = scmp.ne.s32.totalorder %s1373_s30, %s1744_s8  ;;  %p1750_p2 = scmp.lt.s32.totalorder %s1744_s8, %s1744_s8 }
 0x145   :  { %v580_v1 = vmul.f32 %v1598_v9, %v2247_v18  ;;  %1691 = vmatprep.mubr.msk.f32.mxu1 %vm981_vm0, %v963_v38  ;;  %v1613_v18 = vadd.f32 %v2292_v2, %v2280_v57  ;;  %v1616_v57 = vadd.f32 %v1615_v43, %v2297_v30  ;;  %v967_v2 = vadd.f32 %v935_v3, %v583_v31 }
 0x146   :  { %v938_v30 = vmul.f32 %v1491_v61, %v897_v16  ;;  %v1495_v43 = vunpack.c.h.bf16 %v1510_v12  ;;  %p1751_p3 = por %p1750_p2, %p1749_p1 }
 0x147   :  { %v964_v6 = vadd.f32 %v932_v54, %v580_v1  ;;  %v585_v24 = vmul.f32 %v1613_v18, %v540_v47  ;;  %v586_v37 = vmul.f32 %v1616_v57, %v545_v48 }
 0x148   :  { %v940_v47 = vmul.f32 %v1495_v43, %v907_v56  ;;  %p1752_p4 = pnand %p1751_p3, %p1745_p0 }
 0x149   :  { %1692 = vmatmul.mubr.msk.f32.gmra.mxu1 %vm981_vm0, %v964_v6  ;;  %v969_v44 = vadd.f32 %v937_v62, %v585_v24  ;;  %v970_v35 = vadd.f32 %v938_v30, %v586_v37 }
 0x14a   :  { %1694 = vmatprep.mubr.msk.f32.mxu1 %vm981_vm0, %v965_v8  ;;  %v972_v50 = vadd.f32 %v940_v47, %v588_v19 }
 0x14d   :  { %1695 = vmatmul.mubr.msk.f32.gmra.mxu1 %vm981_vm0, %v966_v28 }
 0x14e   :  { %1697 = vmatprep.mubr.msk.f32.mxu1 %vm981_vm0, %v967_v2 }
 0x151   :  { %1698 = vmatmul.mubr.msk.f32.gmra.mxu1 %vm981_vm0, %v968_v42 }
 0x152   :  { %1700 = vmatprep.mubr.msk.f32.mxu1 %vm981_vm0, %v969_v44 }
 0x155   :  { %1701 = vmatmul.mubr.msk.f32.gmra.mxu1 %vm981_vm0, %v970_v35 }
 0x156   :  { %1703 = vmatprep.mubr.msk.f32.mxu1 %vm981_vm0, %v971_v46 }
 0x159   :  { %1704 = vmatmul.mubr.msk.f32.gmra.mxu1 %vm981_vm0, %v972_v50 }
 0x1b1   :  { %v1660_v52 = vpop.f32.mrf.mxu1 }
 0x1b2   :  { %v1150_v4 = vadd.f32 %v1660_v52, %v2358_v51 }
 0x1b3   :  { %v1144_v53 = vpop.f32.mrf.mxu1 }
 0x1b4   :  { %v1304_v45 = vmax.f32 %v1150_v4, 0.0  ;;  %v1145_v25 = vadd.f32 %v2358_v51, %v1144_v53 }
 0x1b6   :  { %1336 = vst [vmem:[#allocation2 + $0x8] sm:$0xff] %v1304_v45  ;;  %v1303_v22 = vmax.f32 %v1145_v25, 0.0 }
 0x1b8   :  { %1335 = vst [vmem:[#allocation2] sm:$0xff] %v1303_v22 }
 0x1b9   :  { %v1663_v15 = vpop.f32.mrf.mxu1 }
 0x1ba   :  { %v1160_v59 = vadd.f32 %v1663_v15, %v2358_v51 }
 0x1bb   :  { %v1154_v26 = vpop.f32.mrf.mxu1 }
 0x1bc   :  { %v1306_v60 = vmax.f32 %v1160_v59, 0.0  ;;  %v1155_v38 = vadd.f32 %v2358_v51, %v1154_v26 }
 0x1be   :  { %1338 = vst [vmem:[#allocation2 + $0x18] sm:$0xff] %v1306_v60  ;;  %v1305_v9 = vmax.f32 %v1155_v38, 0.0 }
 0x1c0   :  { %1337 = vst [vmem:[#allocation2 + $0x10] sm:$0xff] %v1305_v9 }
 0x1c1   :  { %v1666_v11 = vpop.f32.mrf.mxu1 }
 0x1c2   :  { %v1170_v14 = vadd.f32 %v1666_v11, %v2358_v51 }
 0x1c3   :  { %v1164_v27 = vpop.f32.mrf.mxu1 }
 0x1c4   :  { %v1308_v54 = vmax.f32 %v1170_v14, 0.0  ;;  %v1165_v39 = vadd.f32 %v2358_v51, %v1164_v27 }
 0x1c6   :  { %1340 = vst [vmem:[#allocation2 + $0x28] sm:$0xff] %v1308_v54  ;;  %v1307_v16 = vmax.f32 %v1165_v39, 0.0 }
 0x1c8   :  { %1339 = vst [vmem:[#allocation2 + $0x20] sm:$0xff] %v1307_v16 }
 0x1c9   :  { %v1669_v1 = vpop.f32.mrf.mxu1 }
 0x1ca   :  { %v1180_v5 = vadd.f32 %v1669_v1, %v2358_v51 }
 0x1cb   :  { %v1174_v49 = vpop.f32.mrf.mxu1 }
 0x1cc   :  { %v1310_v48 = vmax.f32 %v1180_v5, 0.0  ;;  %v1175_v58 = vadd.f32 %v2358_v51, %v1174_v49 }
 0x1ce   :  { %1342 = vst [vmem:[#allocation2 + $0x38] sm:$0xff] %v1310_v48  ;;  %v1309_v21 = vmax.f32 %v1175_v58, 0.0 }
 0x1d0   :  { %1341 = vst [vmem:[#allocation2 + $0x30] sm:$0xff] %v1309_v21 }
 0x1d1   :  { %v1672_v17 = vpop.f32.mrf.mxu1 }
 0x1d2   :  { %v1190_v6 = vadd.f32 %v1672_v17, %v2358_v51 }
 0x1d3   :  { %v1184_v8 = vpop.f32.mrf.mxu1 }
 0x1d4   :  { %v1312_v31 = vmax.f32 %v1190_v6, 0.0  ;;  %v1185_v18 = vadd.f32 %v2358_v51, %v1184_v8 }
 0x1d6   :  { %1344 = vst [vmem:[#allocation2 + $0x48] sm:$0xff] %v1312_v31  ;;  %v1311_v13 = vmax.f32 %v1185_v18, 0.0 }
 0x1d8   :  { %1343 = vst [vmem:[#allocation2 + $0x40] sm:$0xff] %v1311_v13 }
 0x1d9   :  { %v1675_v20 = vpop.f32.mrf.mxu1 }
 0x1da   :  { %v1200_v32 = vadd.f32 %v1675_v20, %v2358_v51 }
 0x1db   :  { %v1194_v3 = vpop.f32.mrf.mxu1 }
 0x1dc   :  { %v1314_v7 = vmax.f32 %v1200_v32, 0.0  ;;  %v1195_v28 = vadd.f32 %v2358_v51, %v1194_v3 }
 0x1de   :  { %1346 = vst [vmem:[#allocation2 + $0x58] sm:$0xff] %v1314_v7  ;;  %v1313_v10 = vmax.f32 %v1195_v28, 0.0 }
 0x1e0   :  { %1345 = vst [vmem:[#allocation2 + $0x50] sm:$0xff] %v1313_v10 }
 0x1e1   :  { %v1678_v12 = vpop.f32.mrf.mxu1 }
 0x1e2   :  { %v1210_v0 = vadd.f32 %v1678_v12, %v2358_v51 }
 0x1e3   :  { %v1204_v57 = vpop.f32.mrf.mxu1 }
 0x1e4   :  { %v1316_v2 = vmax.f32 %v1210_v0, 0.0  ;;  %v1205_v33 = vadd.f32 %v2358_v51, %v1204_v57 }
 0x1e6   :  { %1348 = vst [vmem:[#allocation2 + $0x68] sm:$0xff] %v1316_v2  ;;  %v1315_v24 = vmax.f32 %v1205_v33, 0.0 }
 0x1e8   :  { %1347 = vst [vmem:[#allocation2 + $0x60] sm:$0xff] %v1315_v24 }
 0x1e9   :  { %v1681_v41 = vpop.f32.mrf.mxu1 }
 0x1ea   :  { %v1220_v34 = vadd.f32 %v1681_v41, %v2358_v51 }
 0x1eb   :  { %v1214_v36 = vpop.f32.mrf.mxu1 }
 0x1ec   :  { %v1318_v61 = vmax.f32 %v1220_v34, 0.0  ;;  %v1215_v62 = vadd.f32 %v2358_v51, %v1214_v36 }
 0x1ee   :  { %1350 = vst [vmem:[#allocation2 + $0x78] sm:$0xff] %v1318_v61  ;;  %v1317_v63 = vmax.f32 %v1215_v62, 0.0 }
 0x1f0   :  { %1349 = vst [vmem:[#allocation2 + $0x70] sm:$0xff] %v1317_v63 }
 0x1f1   :  { %v1684_v42 = vpop.f32.mrf.mxu1 }
 0x1f2   :  { %v1230_v37 = vadd.f32 %v1684_v42, %v2358_v51 }
 0x1f3   :  { %v1224_v40 = vpop.f32.mrf.mxu1 }
 0x1f4   :  { %v1320_v44 = vmax.f32 %v1230_v37, 0.0  ;;  %v1225_v55 = vadd.f32 %v2358_v51, %v1224_v40 }
 0x1f6   :  { %1352 = vst [vmem:[#allocation2 + $0x88] sm:$0xff] %v1320_v44  ;;  %v1319_v30 = vmax.f32 %v1225_v55, 0.0 }
 0x1f8   :  { %1351 = vst [vmem:[#allocation2 + $0x80] sm:$0xff] %v1319_v30 }
 0x1f9   :  { %v1687_v43 = vpop.f32.mrf.mxu1 }
 0x1fa   :  { %v1240_v29 = vadd.f32 %v1687_v43, %v2358_v51 }
 0x1fb   :  { %v1234_v56 = vpop.f32.mrf.mxu1 }
 0x1fc   :  { %v1322_v23 = vmax.f32 %v1240_v29, 0.0  ;;  %v1235_v35 = vadd.f32 %v2358_v51, %v1234_v56 }
 0x1fe   :  { %1354 = vst [vmem:[#allocation2 + $0x98] sm:$0xff] %v1322_v23  ;;  %v1321_v19 = vmax.f32 %v1235_v35, 0.0 }
 0x200   :  { %1353 = vst [vmem:[#allocation2 + $0x90] sm:$0xff] %v1321_v19 }
 0x201   :  { %v1690_v46 = vpop.f32.mrf.mxu1 }
 0x202   :  { %v1250_v47 = vadd.f32 %v1690_v46, %v2358_v51 }
 0x203   :  { %v1244_v50 = vpop.f32.mrf.mxu1 }
 0x204   :  { %v1324_v52 = vmax.f32 %v1250_v47, 0.0  ;;  %v1245_v4 = vadd.f32 %v2358_v51, %v1244_v50 }
 0x206   :  { %1356 = vst [vmem:[#allocation2 + $0xa8] sm:$0xff] %v1324_v52  ;;  %v1323_v53 = vmax.f32 %v1245_v4, 0.0 }
 0x208   :  { %1355 = vst [vmem:[#allocation2 + $0xa0] sm:$0xff] %v1323_v53 }
 0x209   :  { %v1693_v45 = vpop.f32.mrf.mxu1 }
 0x20a   :  { %v1260_v25 = vadd.f32 %v1693_v45, %v2358_v51 }
 0x20b   :  { %v1254_v22 = vpop.f32.mrf.mxu1 }
 0x20c   :  { %v1326_v15 = vmax.f32 %v1260_v25, 0.0  ;;  %v1255_v59 = vadd.f32 %v2358_v51, %v1254_v22 }
 0x20d   :  { %v1696_v26 = vpop.f32.mrf.mxu1 }
 0x20e   :  { %1358 = vst [vmem:[#allocation2 + $0xb8] sm:$0xff] %v1326_v15  ;;  %v1325_v60 = vmax.f32 %v1255_v59, 0.0  ;;  %v1270_v38 = vadd.f32 %v1696_v26, %v2358_v51 }
 0x20f   :  { %v1264_v9 = vpop.f32.mrf.mxu1 }
 0x210   :  { %1357 = vst [vmem:[#allocation2 + $0xb0] sm:$0xff] %v1325_v60  ;;  %v1328_v11 = vmax.f32 %v1270_v38, 0.0  ;;  %v1265_v14 = vadd.f32 %v2358_v51, %v1264_v9 }
 0x211   :  { %v1699_v27 = vpop.f32.mrf.mxu1 }
 0x212   :  { %1360 = vst [vmem:[#allocation2 + $0xc8] sm:$0xff] %v1328_v11  ;;  %v1327_v54 = vmax.f32 %v1265_v14, 0.0  ;;  %v1280_v39 = vadd.f32 %v1699_v27, %v2358_v51 }
 0x213   :  { %v1274_v16 = vpop.f32.mrf.mxu1 }
 0x214   :  { %1359 = vst [vmem:[#allocation2 + $0xc0] sm:$0xff] %v1327_v54  ;;  %v1330_v1 = vmax.f32 %v1280_v39, 0.0  ;;  %v1275_v5 = vadd.f32 %v2358_v51, %v1274_v16 }
 0x215   :  { %v1702_v49 = vpop.f32.mrf.mxu1 }
 0x216   :  { %1362 = vst [vmem:[#allocation2 + $0xd8] sm:$0xff] %v1330_v1  ;;  %v1329_v48 = vmax.f32 %v1275_v5, 0.0  ;;  %v1290_v58 = vadd.f32 %v1702_v49, %v2358_v51 }
 0x217   :  { %v1284_v21 = vpop.f32.mrf.mxu1 }
 0x218   :  { %1361 = vst [vmem:[#allocation2 + $0xd0] sm:$0xff] %v1329_v48  ;;  %v1332_v17 = vmax.f32 %v1290_v58, 0.0  ;;  %v1285_v6 = vadd.f32 %v2358_v51, %v1284_v21 }
 0x219   :  { %v1705_v8 = vpop.f32.mrf.mxu1 }
 0x21a   :  { %1364 = vst [vmem:[#allocation2 + $0xe8] sm:$0xff] %v1332_v17  ;;  %v1331_v31 = vmax.f32 %v1285_v6, 0.0  ;;  %v1300_v18 = vadd.f32 %v1705_v8, %v2358_v51 }
 0x21b   :  { %v1294_v13 = vpop.f32.mrf.mxu1 }
 0x21c   :  { %1363 = vst [vmem:[#allocation2 + $0xe0] sm:$0xff] %v1331_v31  ;;  %v1334_v20 = vmax.f32 %v1300_v18, 0.0  ;;  %v1295_v32 = vadd.f32 %v2358_v51, %v1294_v13 }
 0x21e   :  { %1366 = vst [vmem:[#allocation2 + $0xf8] sm:$0xff] %v1334_v20  ;;  %v1333_v3 = vmax.f32 %v1295_v32, 0.0 }
 0x220   :  { %1365 = vst [vmem:[#allocation2 + $0xf0] sm:$0xff] %v1333_v3 }
 0x221   :  { %1755 = shalt.err (!%p1752_p4)
}
 0x222   :  { %s1768_s9 = smov 128   ;;  %s1769_s10 = smov 8  }
 0x223   :  { %1378 = dma.vmem_to_hbm [thread:$0]  %s1373_s30, 4096, %s2402_s7, [#allocation3], %s1768_s9, %s1768_s9, %s1769_s10  }
 0x224   :  { %1764 = dma.done.wait [#allocation3], 4096  }
 0x225   :  { %1765 = vsyncadd [#allocation3], 4294963200 }
 0x226   :  { %1382 = vsyncpa [#allocation3], 1 }

</bundles_post_ra>
